<compile_context>
chip_gen: v7x
topology: tpu7x:2x2x1
jax: 0.10.0
libtpu: 0.0.40
codegen_flags: <defaults>
</compile_context>

<pallas_src>
import jax
import jax.numpy as jnp
from jax import lax
from jax.experimental import pallas as pl
from jax.experimental.pallas import tpu as pltpu

NCLASSES = 500
HIDDEN = 512
LANES = 128
SUBLANE_BF16 = 16
NPAD = ((NCLASSES + LANES - 1) // LANES) * LANES   # 512: lane-dense class dim


def _round_up(x, m):
    return ((x + m - 1) // m) * m


def _tpu_defaults():
    """Chip-aware (batch tile, tensorcore count) defaults."""
    try:
        kind = jax.devices()[0].device_kind.lower()
    except Exception:  # pragma: no cover - non-TPU fallback
        return 128, 1
    if "v7" in kind:
        return 256, 2          # 2x256 MXU, 2 TCs/chip
    if "v6" in kind:
        return 256, 1          # 2x256 MXU
    if "v5e" in kind or "v5 lite" in kind or "v5lite" in kind:
        return 128, 1          # 4x128 MXU
    if "v5" in kind or "v4" in kind:
        return 128, 2          # megacore
    return 128, 1


def _spec(shape, index_map, buffers=None):
    """BlockSpec, optionally with an explicit pipeline buffer count."""
    if buffers is None:
        return pl.BlockSpec(shape, index_map)
    try:
        return pl.BlockSpec(shape, index_map, pipeline_mode=pl.Buffered(buffers))
    except TypeError:  # older jax without pipeline_mode kwarg
        return pl.BlockSpec(shape, index_map)


def head_kernel(x_ref, w1_ref, b1_ref, w2_ref, b2_ref, o_ref, acc_ref):
    """Fused fc1 -> bias -> ReLU -> fc2 -> bias, K-tiled over the feature dim."""
    k = pl.program_id(1)

    @pl.when(k == 0)
    def _():
        acc_ref[...] = jnp.zeros_like(acc_ref)

    # fc1 partial product: bf16 x bf16 operands, f32 accumulation on the MXU.
    acc_ref[...] += jnp.dot(x_ref[...], w1_ref[...],
                            preferred_element_type=jnp.float32)

    @pl.when(k == pl.num_programs(1) - 1)
    def _():
        h = jnp.maximum(acc_ref[...] + b1_ref[...], 0.0)          # bias + ReLU (VPU)
        # fc2: cast hidden activations to bf16 so the second matmul also runs
        # the bf16 MXU path; accumulate in f32, store lane-dense logits.
        o = jnp.dot(h.astype(jnp.bfloat16), w2_ref[...],
                    preferred_element_type=jnp.float32)
        o_ref[...] = (o + b2_ref[...]).astype(o_ref.dtype)


def prepare_head_params(w1, b1, w2, b2, *, tk=2048):
    """One-time parameter prep (hoisted out of the per-call hot path).

    Casts weights to bf16, zero-pads the 500-wide class dim to 512 (lane-dense
    stores, dense MXU N) and zero-pads the feature dim to a multiple of the
    K tile.  Padded rows/cols are zero so they contribute nothing.
    """
    F = w1.shape[0]
    tk_eff = min(_round_up(tk, LANES), _round_up(F, LANES))
    Fp = _round_up(F, tk_eff)
    w1b = jnp.pad(w1.astype(jnp.bfloat16), ((0, Fp - F), (0, 0)))
    w2b = jnp.pad(w2.astype(jnp.bfloat16), ((0, 0), (0, NPAD - NCLASSES)))
    b1f = jnp.asarray(b1, jnp.float32).reshape(1, HIDDEN)
    b2f = jnp.pad(jnp.asarray(b2, jnp.float32).reshape(1, NCLASSES),
                  ((0, 0), (0, NPAD - NCLASSES)))
    return {"w1": w1b, "b1": b1f, "w2": w2b, "b2": b2f,
            "F": F, "Fp": Fp, "tk": tk_eff}


def sketch_head(x_flat, params, *, tm=None, out_dtype=jnp.float32):
    """fc1 -> ReLU -> fc2 head.

    x_flat: [B, F] flattened features; params: output of prepare_head_params.
    Returns logits [B, 500] (f32 by default; pass out_dtype=jnp.bfloat16 if
    downstream only needs argmax/softmax to halve writeback bytes).
    """
    B, F = x_flat.shape
    assert F == params["F"]
    Fp, tk_eff = params["Fp"], params["tk"]

    tm_default, n_cores = _tpu_defaults()
    if tm is None:
        tm = tm_default

    # Batch tile: multiple of 16 (bf16 sublane packing), capped at tm; on
    # multi-TC chips cap further so the "parallel" batch axis has >= n_cores
    # grid steps (both TensorCores fed) whenever the batch allows it.
    tm_eff = min(tm, _round_up(B, SUBLANE_BF16))
    if n_cores >= 2 and B >= 2 * SUBLANE_BF16:
        tm_eff = min(tm_eff,
                     max(SUBLANE_BF16, _round_up(pl.cdiv(B, n_cores), SUBLANE_BF16)))
    Bp = _round_up(B, tm_eff)

    xb = x_flat.astype(jnp.bfloat16)
    if Bp != B or Fp != F:
        xb = jnp.pad(xb, ((0, Bp - B), (0, Fp - F)))

    kt = Fp // tk_eff

    in_specs = [
        # x tile: streams over (batch, k); double-buffered by default.
        _spec((tm_eff, tk_eff), lambda i, k: (i, k)),
        # w1: streams over k when K-tiled, resident (single-buffered) otherwise.
        (_spec((tk_eff, HIDDEN), lambda i, k: (0, 0), buffers=1) if kt == 1
         else _spec((tk_eff, HIDDEN), lambda i, k: (k, 0))),
        _spec((1, HIDDEN), lambda i, k: (0, 0), buffers=1),       # b1: resident
        _spec((HIDDEN, NPAD), lambda i, k: (0, 0), buffers=1),    # w2: resident
        _spec((1, NPAD), lambda i, k: (0, 0), buffers=1),         # b2: resident
    ]

    # VMEM footprint estimate; raise the scoped limit only when needed
    # (large feature_dim) — defaults (16/32 MiB) suffice at demo shapes.
    vmem_est = (2 * tm_eff * tk_eff * 2                       # x buffers (bf16)
                + (1 if kt == 1 else 2) * tk_eff * HIDDEN * 2  # w1 buffers
                + HIDDEN * NPAD * 2                            # w2 resident
                + (HIDDEN + NPAD) * 4                          # biases
                + 2 * tm_eff * NPAD * jnp.dtype(out_dtype).itemsize  # out buffers
                + tm_eff * HIDDEN * 4)                         # f32 accumulator
    cp_kwargs = {"dimension_semantics": ("parallel", "arbitrary")}
    if vmem_est > 28 * (1 << 20):
        cp_kwargs["vmem_limit_bytes"] = int(min(vmem_est * 5 // 4, 100 << 20))

    out = pl.pallas_call(
        head_kernel,
        out_shape=jax.ShapeDtypeStruct((Bp, NPAD), out_dtype),
        grid=(Bp // tm_eff, kt),
        in_specs=in_specs,
        out_specs=pl.BlockSpec((tm_eff, NPAD), lambda i, k: (i, 0)),
        scratch_shapes=[pltpu.VMEM((tm_eff, HIDDEN), jnp.float32)],
        compiler_params=pltpu.CompilerParams(**cp_kwargs),
    )(xb, params["w1"], params["b1"], params["w2"], params["b2"])

    return out[:B, :NCLASSES]


def frozen_feature_extractor(x, conv_w, conv_b):
    # TODO(synk): the real feature_extractor is an external, unspecified frozen
    # backbone (e.g. torchvision); this deterministic conv+ReLU stand-in only
    # reproduces its interface (NCHW image in, feature map out).
    y = lax.conv_general_dilated(
        x, conv_w, window_strides=(2, 2), padding="SAME",
        dimension_numbers=("NCHW", "OIHW", "NCHW"))
    y = y + conv_b[None, :, None, None]
    return jnp.maximum(y, 0.0)


if __name__ == "__main__":
    key = jax.random.PRNGKey(0)
    kx, kcw, kcb, kw1, kb1, kw2, kb2 = jax.random.split(key, 7)

    # Small, module-consistent shapes: batch=2, 3 input channels, 16x16 spatial.
    B, C, H, W = 2, 3, 16, 16
    x = jax.random.normal(kx, (B, C, H, W), dtype=jnp.float32)

    # Frozen stand-in feature extractor parameters (deterministic).
    FE_OUT_CH = 4
    conv_w = 0.1 * jax.random.normal(kcw, (FE_OUT_CH, C, 3, 3), dtype=jnp.float32)
    conv_b = 0.1 * jax.random.normal(kcb, (FE_OUT_CH,), dtype=jnp.float32)

    feats = frozen_feature_extractor(x, conv_w, conv_b)        # [B, 4, 8, 8]
    x_flat = feats.reshape(B, -1)                              # x.view(B, -1)
    feature_dim = x_flat.shape[1]                              # 256
    print("Feature dimension:", feature_dim)

    # Head parameters, PyTorch nn.Linear-style uniform init (deterministic).
    k1 = 1.0 / jnp.sqrt(jnp.float32(feature_dim))
    w1 = jax.random.uniform(kw1, (feature_dim, HIDDEN), jnp.float32, -k1, k1)
    b1 = jax.random.uniform(kb1, (1, HIDDEN), jnp.float32, -k1, k1)
    k2 = 1.0 / jnp.sqrt(jnp.float32(HIDDEN))
    w2 = jax.random.uniform(kw2, (HIDDEN, NCLASSES), jnp.float32, -k2, k2)
    b2 = jax.random.uniform(kb2, (1, NCLASSES), jnp.float32, -k2, k2)

    # One-time weight prep (bf16 cast + padding) — outside the per-call path.
    head_params = jax.tree_util.tree_map(
        jax.block_until_ready, prepare_head_params(w1, b1, w2, b2))

    logits = jax.block_until_ready(sketch_head(x_flat, head_params))
    assert logits.shape == (B, NCLASSES)

    # Reference mirroring kernel numerics (bf16 operands, f32 accumulation).
    h_ref = jnp.maximum(
        jnp.dot(x_flat.astype(jnp.bfloat16), w1.astype(jnp.bfloat16),
                preferred_element_type=jnp.float32) + b1, 0.0)
    ref_bf16 = jnp.dot(h_ref.astype(jnp.bfloat16), w2.astype(jnp.bfloat16),
                       preferred_element_type=jnp.float32) + b2
    assert jnp.allclose(logits, ref_bf16, atol=1e-2, rtol=1e-2)

    # Full-f32 semantic reference (module semantics); tolerance loosened for
    # bf16 operand rounding.
    ref_f32 = jnp.maximum(x_flat @ w1 + b1, 0.0) @ w2 + b2
    assert jnp.allclose(logits, ref_f32, atol=2e-2, rtol=2e-2)

    print("KERNEL_OK")
</pallas_src>

<mosaic_0001>
module attributes {stable_mosaic.version = 11 : i64} {
  func.func @head_kernel(%arg0: i32, %arg1: i32, %arg2: memref<16x256xbf16, #tpu.memory_space<vmem>>, %arg3: memref<256x512xbf16, #tpu.memory_space<vmem>>, %arg4: memref<1x512xf32, #tpu.memory_space<vmem>>, %arg5: memref<512x512xbf16, #tpu.memory_space<vmem>>, %arg6: memref<1x512xf32, #tpu.memory_space<vmem>>, %arg7: memref<16x512xf32, #tpu.memory_space<vmem>>, %arg8: memref<16x512xf32, #tpu.memory_space<vmem>>) attributes {dimension_semantics = [#tpu.dimension_semantics<parallel>, #tpu.dimension_semantics<arbitrary>], iteration_bounds = array<i64: 1, 1>, scalar_prefetch = 0 : i64, scratch_operands = 1 : i64, tpu.core_type = #tpu.core_type<tc>, window_params = [{transform_indices = @transform_0, window_bounds = array<i64: 16, 256>}, {pipeline_mode = #tpu.pipeline_mode<synchronous>, transform_indices = @transform_1, window_bounds = array<i64: 256, 512>}, {pipeline_mode = #tpu.pipeline_mode<synchronous>, transform_indices = @transform_2, window_bounds = array<i64: 1, 512>}, {pipeline_mode = #tpu.pipeline_mode<synchronous>, transform_indices = @transform_3, window_bounds = array<i64: 512, 512>}, {pipeline_mode = #tpu.pipeline_mode<synchronous>, transform_indices = @transform_4, window_bounds = array<i64: 1, 512>}, {transform_indices = @transform_5, window_bounds = array<i64: 16, 512>}]} {
    %c0_i32 = arith.constant 0 : i32
    %0 = arith.cmpi eq, %arg1, %c0_i32 : i32
    %1 = arith.extui %0 : i1 to i32
    %c0_i32_0 = arith.constant 0 : i32
    %2 = arith.cmpi ne, %1, %c0_i32_0 : i32
    scf.if %2 {
      %cst_10 = arith.constant 0.000000e+00 : f32
      %12 = vector.broadcast %cst_10 : f32 to vector<16x512xf32>
      %c0_11 = arith.constant 0 : index
      %c0_12 = arith.constant 0 : index
      %13 = vector.load %arg8[%c0_11, %c0_12] : memref<16x512xf32, #tpu.memory_space<vmem>>, vector<16x512xf32>
      tpu.vector_store %arg8[%c0_11, %c0_12], %12 {strides = array<i32>} : memref<16x512xf32, #tpu.memory_space<vmem>>, vector<16x512xf32>,
    } else {
    }
    %c0 = arith.constant 0 : index
    %c0_1 = arith.constant 0 : index
    %3 = vector.load %arg8[%c0, %c0_1] : memref<16x512xf32, #tpu.memory_space<vmem>>, vector<16x512xf32>
    %c0_2 = arith.constant 0 : index
    %c0_3 = arith.constant 0 : index
    %4 = vector.load %arg2[%c0_2, %c0_3] : memref<16x256xbf16, #tpu.memory_space<vmem>>, vector<16x256xbf16>
    %c0_4 = arith.constant 0 : index
    %c0_5 = arith.constant 0 : index
    %5 = vector.load %arg3[%c0_4, %c0_5] : memref<256x512xbf16, #tpu.memory_space<vmem>>, vector<256x512xbf16>
    %cst = arith.constant dense<0.000000e+00> : vector<16x512xf32>
    %6 = tpu.matmul %4, %5, %cst {dimension_numbers = #tpu.dot_dimension_numbers<[1], [0], [0], [1], [0, 0, 1, 1], [], []>} : vector<16x256xbf16>, vector<256x512xbf16>, vector<16x512xf32> -> vector<16x512xf32>
    %7 = arith.addf %3, %6 : vector<16x512xf32>
    %c0_6 = arith.constant 0 : index
    %c0_7 = arith.constant 0 : index
    %8 = vector.load %arg8[%c0_6, %c0_7] : memref<16x512xf32, #tpu.memory_space<vmem>>, vector<16x512xf32>
    tpu.vector_store %arg8[%c0_6, %c0_7], %7 {strides = array<i32>} : memref<16x512xf32, #tpu.memory_space<vmem>>, vector<16x512xf32>,
    %c0_i32_8 = arith.constant 0 : i32
    %9 = arith.cmpi eq, %arg1, %c0_i32_8 : i32
    %10 = arith.extui %9 : i1 to i32
    %c0_i32_9 = arith.constant 0 : i32
    %11 = arith.cmpi ne, %10, %c0_i32_9 : i32
    scf.if %11 {
      %c0_10 = arith.constant 0 : index
      %c0_11 = arith.constant 0 : index
      %12 = vector.load %arg8[%c0_10, %c0_11] : memref<16x512xf32, #tpu.memory_space<vmem>>, vector<16x512xf32>
      %c0_12 = arith.constant 0 : index
      %c0_13 = arith.constant 0 : index
      %13 = vector.load %arg4[%c0_12, %c0_13] : memref<1x512xf32, #tpu.memory_space<vmem>>, vector<1x512xf32>
      %14 = vector.broadcast %13 : vector<1x512xf32> to vector<16x512xf32>
      %15 = arith.addf %12, %14 : vector<16x512xf32>
      %cst_14 = arith.constant 0.000000e+00 : f32
      %16 = vector.broadcast %cst_14 : f32 to vector<16x512xf32>
      %17 = arith.maximumf %15, %16 : vector<16x512xf32>
      %18 = arith.truncf %17 : vector<16x512xf32> to vector<16x512xbf16>
      %c0_15 = arith.constant 0 : index
      %c0_16 = arith.constant 0 : index
      %19 = vector.load %arg5[%c0_15, %c0_16] : memref<512x512xbf16, #tpu.memory_space<vmem>>, vector<512x512xbf16>
      %cst_17 = arith.constant dense<0.000000e+00> : vector<16x512xf32>
      %20 = tpu.matmul %18, %19, %cst_17 {dimension_numbers = #tpu.dot_dimension_numbers<[1], [0], [0], [1], [0, 0, 1, 1], [], []>} : vector<16x512xbf16>, vector<512x512xbf16>, vector<16x512xf32> -> vector<16x512xf32>
      %c0_18 = arith.constant 0 : index
      %c0_19 = arith.constant 0 : index
      %21 = vector.load %arg6[%c0_18, %c0_19] : memref<1x512xf32, #tpu.memory_space<vmem>>, vector<1x512xf32>
      %22 = vector.broadcast %21 : vector<1x512xf32> to vector<16x512xf32>
      %23 = arith.addf %20, %22 : vector<16x512xf32>
      %c0_20 = arith.constant 0 : index
      %c0_21 = arith.constant 0 : index
      %24 = vector.load %arg7[%c0_20, %c0_21] : memref<16x512xf32, #tpu.memory_space<vmem>>, vector<16x512xf32>
      tpu.vector_store %arg7[%c0_20, %c0_21], %23 {strides = array<i32>} : memref<16x512xf32, #tpu.memory_space<vmem>>, vector<16x512xf32>,
    } else {
    }
    return
  }
  func.func @transform_0(%arg0: i32, %arg1: i32) -> (i32, i32) {
    %c0_i32 = arith.constant 0 : i32
    return %arg0, %arg1 : i32, i32
  }
  func.func @transform_1(%arg0: i32, %arg1: i32) -> (i32, i32) {
    %c0_i32 = arith.constant 0 : i32
    %c0_i32_0 = arith.constant 0 : i32
    %c0_i32_1 = arith.constant 0 : i32
    return %c0_i32, %c0_i32_0 : i32, i32
  }
  func.func @transform_2(%arg0: i32, %arg1: i32) -> (i32, i32) {
    %c0_i32 = arith.constant 0 : i32
    %c0_i32_0 = arith.constant 0 : i32
    %c0_i32_1 = arith.constant 0 : i32
    return %c0_i32, %c0_i32_0 : i32, i32
  }
  func.func @transform_3(%arg0: i32, %arg1: i32) -> (i32, i32) {
    %c0_i32 = arith.constant 0 : i32
    %c0_i32_0 = arith.constant 0 : i32
    %c0_i32_1 = arith.constant 0 : i32
    return %c0_i32, %c0_i32_0 : i32, i32
  }
  func.func @transform_4(%arg0: i32, %arg1: i32) -> (i32, i32) {
    %c0_i32 = arith.constant 0 : i32
    %c0_i32_0 = arith.constant 0 : i32
    %c0_i32_1 = arith.constant 0 : i32
    return %c0_i32, %c0_i32_0 : i32, i32
  }
  func.func @transform_5(%arg0: i32, %arg1: i32) -> (i32, i32) {
    %c0_i32 = arith.constant 0 : i32
    %c0_i32_0 = arith.constant 0 : i32
    return %arg0, %c0_i32 : i32, i32
  }
}

</mosaic_0001>

<bundles_post_ra>
// kernel: tpu_custom_call.1
= control target key start
LH: loop header
LB: loop body
LE: loop exit
PB: predicated region body
PF: predicated region fallthrough
CT: control target
= control target key end

     0   :  { %10 = vsyncpa [#allocation4], 0  ;;  %s2352_s0 = inlined_call_operand.hbm [shape: bf16[16,256], index: 0, kind: input, shape index: {}]   ;;  %s2353_s1 = inlined_call_operand.hbm [shape: bf16[256,512], index: 1, kind: input, shape index: {}]   ;;  %s2354_s2 = inlined_call_operand.vmem [shape: f32[1,512], index: 2, kind: input, shape index: {}]   ;;  %s2355_s3 = inlined_call_operand.hbm [shape: bf16[512,512], index: 3, kind: input, shape index: {}]   ;;  %s2356_s4 = inlined_call_operand.vmem [shape: f32[1,512], index: 4, kind: input, shape index: {}]   ;;  %s2357_s5 = inlined_call_operand.hbm [shape: f32[16,512], index: 5, kind: output, shape index: {}]  }
   0x1   :  { %11 = vsyncpa [#allocation7], 0 }
   0x2   :  { %12 = vsyncpa [#allocation5], 0  ;;  %s2226_s18 = smov [#allocation6]   ;;  %s2132_s22 = scalar_lea.hbm %s2353_s1, 8192 }
   0x3   :  { %s30_s19 = sshll.u32 %s2226_s18, 4  ;;  %p2133_p0 = scmp.ne.s32.totalorder %s2353_s1, %s2132_s22  ;;  %s31_s19 = int_to_ptr.vmem [resolvable:$true] %s30_s19 }
   0x4   :  { %p2136_p1 = scmp.lt.u32.totalorder %s2132_s22, %s2353_s1 }
   0x6   :  { %p2138_p2 = pnand %p2136_p1, %p2133_p0 }
   0x8   :  { %2141 = shalt.err (!%p2138_p2)
}
   0x9   :  { %s2142_s27 = scalar_lea.vmem %s31_s19, 8192  ;;  %p2147_p4 = scmp.lt.s32.totalorder %s31_s19, %s31_s19 }
   0xa   :  { %p2143_p3 = scmp.ne.s32.totalorder %s31_s19, %s2142_s27  ;;  %p2148_p5 = scmp.lt.s32.totalorder %s2142_s27, %s2142_s27 }
   0xc   :  { %p2149_p6 = por %p2148_p5, %p2147_p4 }
   0xe   :  { %p2150_p7 = pnand %p2149_p6, %p2143_p3 }
  0x10   :  { %2153 = shalt.err (!%p2150_p7)
}
  0x11   :  { %s2227_s28 = smov 256   ;;  %s2228_s29 = smov 16  }
  0x12   :  { %36 = dma.hbm_to_vmem [thread:$0]  %s2353_s1, 8192, %s31_s19, [#allocation7], %s2227_s28, %s2227_s28, %s2228_s29  }
  0x13   :  { %s2229_s7 = smov [#allocation3]   ;;  %s2154_s11 = scalar_lea.hbm %s2352_s0, 256 }
  0x14   :  { %s18_s8 = sshll.u32 %s2229_s7, 4  ;;  %p2155_p8 = scmp.ne.s32.totalorder %s2352_s0, %s2154_s11  ;;  %s19_s8 = int_to_ptr.vmem [resolvable:$true] %s18_s8 }
  0x15   :  { %p2158_p9 = scmp.lt.u32.totalorder %s2154_s11, %s2352_s0 }
  0x17   :  { %p2160_p10 = pnand %p2158_p9, %p2155_p8 }
  0x19   :  { %2163 = shalt.err (!%p2160_p10)
}
  0x1a   :  { %s2164_s16 = scalar_lea.vmem %s19_s8, 256  ;;  %p2169_p12 = scmp.lt.s32.totalorder %s19_s8, %s19_s8 }
  0x1b   :  { %p2165_p11 = scmp.ne.s32.totalorder %s19_s8, %s2164_s16  ;;  %p2170_p13 = scmp.lt.s32.totalorder %s2164_s16, %s2164_s16 }
  0x1d   :  { %p2171_p0 = por %p2170_p13, %p2169_p12 }
  0x1f   :  { %p2172_p1 = pnand %p2171_p0, %p2165_p11 }
  0x21   :  { %2175 = shalt.err (!%p2172_p1)
}
  0x22   :  { %s2230_s1 = smov 128   ;;  %s2231_s17 = smov 8  }
  0x23   :  { %24 = dma.hbm_to_vmem [thread:$0]  %s2352_s0, 256, %s19_s8, [#allocation4], %s2230_s1, %s2230_s1, %s2231_s17  }
  0x24   :  { %s2232_s20 = smov [#allocation8]   ;;  %s2176_s24 = scalar_lea.hbm %s2355_s3, 16384 }
  0x25   :  { %s44_s21 = sshll.u32 %s2232_s20, 4  ;;  %p2177_p2 = scmp.ne.s32.totalorder %s2355_s3, %s2176_s24  ;;  %s45_s21 = int_to_ptr.vmem [resolvable:$true] %s44_s21 }
  0x26   :  { %p2180_p3 = scmp.lt.u32.totalorder %s2176_s24, %s2355_s3 }
  0x28   :  { %p2182_p4 = pnand %p2180_p3, %p2177_p2 }
  0x2a   :  { %2185 = shalt.err (!%p2182_p4)
}
  0x2b   :  { %s2186_s6 = scalar_lea.vmem %s45_s21, 16384  ;;  %p2191_p6 = scmp.lt.s32.totalorder %s45_s21, %s45_s21 }
  0x2c   :  { %p2187_p5 = scmp.ne.s32.totalorder %s45_s21, %s2186_s6  ;;  %p2192_p7 = scmp.lt.s32.totalorder %s2186_s6, %s2186_s6 }
  0x2e   :  { %p2193_p8 = por %p2192_p7, %p2191_p6 }
  0x30   :  { %p2194_p9 = pnand %p2193_p8, %p2187_p5 }
  0x32   :  { %2197 = shalt.err (!%p2194_p9)
}
  0x33   :  { %50 = dma.hbm_to_vmem [thread:$0]  %s2355_s3, 16384, %s45_s21, [#allocation7], %s2227_s28, %s2227_s28, %s2228_s29  }
  0x34   :  { %2220 = dma.done.wait [#allocation4], 256  }
  0x35   :  { %2221 = vsyncadd [#allocation4], 4294967040 }
  0x36   :  { %2222 = dma.done.wait [#allocation7], 24576  }
  0x37   :  { %2223 = vsyncadd [#allocation7], 4294942720  ;;  %v1841_v0 = vld [vmem:[#allocation6 + $0x4] ss:$16 sps:$4 sm:$0xff]   ;;  %v1843_v1 = vld [vmem:[#allocation6] ss:$16 sps:$4 sm:$0xff]  }
  0x38   :  { %478 = vmatprep.subr.bf16.mxu0 %v1841_v0  ;;  %v1844_v2 = vld [vmem:[#allocation6 + $0x24] ss:$16 sps:$4 sm:$0xff]   ;;  %v1846_v3 = vld [vmem:[#allocation6 + $0x20] ss:$16 sps:$4 sm:$0xff]   ;;  %v1888_v13 = vld [vmem:[#allocation6 + $0xc] ss:$16 sps:$4 sm:$0xff]  }
  0x39   :  { %479 = vmatpush1.bf16.msra.mxu0 %v1843_v1  ;;  %v1847_v4 = vld [vmem:[#allocation6 + $0x44] ss:$16 sps:$4 sm:$0xff]   ;;  %v1849_v5 = vld [vmem:[#allocation6 + $0x40] ss:$16 sps:$4 sm:$0xff]   ;;  %v1891_v15 = vld [vmem:[#allocation6 + $0x8] ss:$16 sps:$4 sm:$0xff]   ;;  %521 = vmatprep.subr.bf16.mxu1 %v1888_v13 }
  0x3a   :  { %480 = vmatprep.subr.bf16.mxu0 %v1844_v2  ;;  %v1850_v6 = vld [vmem:[#allocation6 + $0x64] ss:$16 sps:$4 sm:$0xff]   ;;  %v1852_v7 = vld [vmem:[#allocation6 + $0x60] ss:$16 sps:$4 sm:$0xff]   ;;  %522 = vmatpush1.bf16.msra.mxu1 %v1891_v15  ;;  %v1895_v18 = vld [vmem:[#allocation6 + $0x2c] ss:$16 sps:$4 sm:$0xff]  }
  0x3b   :  { %v1853_v8 = vld [vmem:[#allocation6 + $0x84] ss:$16 sps:$4 sm:$0xff]   ;;  %v1855_v9 = vld [vmem:[#allocation6 + $0x80] ss:$16 sps:$4 sm:$0xff]   ;;  %v1897_v19 = vld [vmem:[#allocation6 + $0x28] ss:$16 sps:$4 sm:$0xff]   ;;  %523 = vmatprep.subr.bf16.mxu1 %v1895_v18 }
  0x3c   :  { %v1856_v10 = vld [vmem:[#allocation6 + $0xa4] ss:$16 sps:$4 sm:$0xff]   ;;  %v1858_v11 = vld [vmem:[#allocation6 + $0xa0] ss:$16 sps:$4 sm:$0xff]   ;;  %v1898_v20 = vld [vmem:[#allocation6 + $0x4c] ss:$16 sps:$4 sm:$0xff]  }
  0x3d   :  { %481 = vmatpush1.bf16.msra.mxu0 %v1846_v3  ;;  %v1859_v12 = vld [vmem:[#allocation6 + $0xc4] ss:$16 sps:$4 sm:$0xff]   ;;  %v1861_v14 = vld [vmem:[#allocation6 + $0xc0] ss:$16 sps:$4 sm:$0xff]   ;;  %v1900_v23 = vld [vmem:[#allocation6 + $0x48] ss:$16 sps:$4 sm:$0xff]  }
  0x3e   :  { %482 = vmatprep.subr.bf16.mxu0 %v1847_v4  ;;  %v1862_v16 = vld [vmem:[#allocation6 + $0xe4] ss:$16 sps:$4 sm:$0xff]   ;;  %v1864_v21 = vld [vmem:[#allocation6 + $0xe0] ss:$16 sps:$4 sm:$0xff]   ;;  %524 = vmatpush1.bf16.msra.mxu1 %v1897_v19  ;;  %v1901_v24 = vld [vmem:[#allocation6 + $0x6c] ss:$16 sps:$4 sm:$0xff]  }
  0x3f   :  { %v1894_v17 = vld [vmem:[#allocation3 + $0x4] ss:$8 sps:$4 sm:$0xff]   ;;  %525 = vmatprep.subr.bf16.mxu1 %v1898_v20  ;;  %v1867_v25 = vld [vmem:[#allocation6 + $0x100] ss:$16 sps:$4 sm:$0xff]   ;;  %v1903_v27 = vld [vmem:[#allocation6 + $0x68] ss:$16 sps:$4 sm:$0xff]  }
  0x40   :  { %510 = vmatprep.mubr.bf16.mxu0 %v1894_v17  ;;  %553 = vmatprep.mubr.bf16.mxu1 %v1894_v17  ;;  %v1865_v22 = vld [vmem:[#allocation6 + $0x104] ss:$16 sps:$4 sm:$0xff]   ;;  %v1904_v28 = vld [vmem:[#allocation6 + $0x8c] ss:$16 sps:$4 sm:$0xff]   ;;  %v1870_v29 = vld [vmem:[#allocation6 + $0x120] ss:$16 sps:$4 sm:$0xff]  }
  0x41   :  { %483 = vmatpush1.bf16.msra.mxu0 %v1849_v5  ;;  %v1868_v26 = vld [vmem:[#allocation6 + $0x124] ss:$16 sps:$4 sm:$0xff]   ;;  %v1906_v31 = vld [vmem:[#allocation6 + $0x88] ss:$16 sps:$4 sm:$0xff]   ;;  %v1907_v32 = vld [vmem:[#allocation6 + $0xac] ss:$16 sps:$4 sm:$0xff]  }
  0x42   :  { %484 = vmatprep.subr.bf16.mxu0 %v1850_v6  ;;  %526 = vmatpush1.bf16.msra.mxu1 %v1900_v23  ;;  %v1871_v30 = vld [vmem:[#allocation6 + $0x144] ss:$16 sps:$4 sm:$0xff]   ;;  %v1873_v33 = vld [vmem:[#allocation6 + $0x140] ss:$16 sps:$4 sm:$0xff]   ;;  %v1909_v35 = vld [vmem:[#allocation6 + $0xa8] ss:$16 sps:$4 sm:$0xff]  }
  0x43   :  { %527 = vmatprep.subr.bf16.mxu1 %v1901_v24  ;;  %v1874_v34 = vld [vmem:[#allocation6 + $0x164] ss:$16 sps:$4 sm:$0xff]   ;;  %v1910_v36 = vld [vmem:[#allocation6 + $0xcc] ss:$16 sps:$4 sm:$0xff]   ;;  %v1876_v37 = vld [vmem:[#allocation6 + $0x160] ss:$16 sps:$4 sm:$0xff]  }
  0x44   :  { %v1877_v38 = vld [vmem:[#allocation6 + $0x184] ss:$16 sps:$4 sm:$0xff]   ;;  %v1912_v39 = vld [vmem:[#allocation6 + $0xc8] ss:$16 sps:$4 sm:$0xff]   ;;  %v1913_v40 = vld [vmem:[#allocation6 + $0xec] ss:$16 sps:$4 sm:$0xff]  }
  0x45   :  { %485 = vmatpush1.bf16.msra.mxu0 %v1852_v7  ;;  %v1879_v41 = vld [vmem:[#allocation6 + $0x180] ss:$16 sps:$4 sm:$0xff]   ;;  %v1880_v42 = vld [vmem:[#allocation6 + $0x1a4] ss:$16 sps:$4 sm:$0xff]   ;;  %v1915_v43 = vld [vmem:[#allocation6 + $0xe8] ss:$16 sps:$4 sm:$0xff]  }
  0x46   :  { %486 = vmatprep.subr.bf16.mxu0 %v1853_v8  ;;  %528 = vmatpush1.bf16.msra.mxu1 %v1903_v27  ;;  %v1916_v44 = vld [vmem:[#allocation6 + $0x10c] ss:$16 sps:$4 sm:$0xff]   ;;  %v1882_v45 = vld [vmem:[#allocation6 + $0x1a0] ss:$16 sps:$4 sm:$0xff]   ;;  %v1883_v46 = vld [vmem:[#allocation6 + $0x1c4] ss:$16 sps:$4 sm:$0xff]  }
  0x47   :  { %529 = vmatprep.subr.bf16.mxu1 %v1904_v28  ;;  %v1918_v47 = vld [vmem:[#allocation6 + $0x108] ss:$16 sps:$4 sm:$0xff]   ;;  %v1919_v48 = vld [vmem:[#allocation6 + $0x12c] ss:$16 sps:$4 sm:$0xff]   ;;  %v1885_v49 = vld [vmem:[#allocation6 + $0x1c0] ss:$16 sps:$4 sm:$0xff]  }
  0x48   :  { %v1886_v50 = vld [vmem:[#allocation6 + $0x1e4] ss:$16 sps:$4 sm:$0xff]   ;;  %v1921_v51 = vld [vmem:[#allocation6 + $0x128] ss:$16 sps:$4 sm:$0xff]   ;;  %v1922_v52 = vld [vmem:[#allocation6 + $0x14c] ss:$16 sps:$4 sm:$0xff]  }
  0x49   :  { %487 = vmatpush1.bf16.msra.mxu0 %v1855_v9  ;;  %v1890_v53 = vld [vmem:[#allocation6 + $0x1e0] ss:$16 sps:$4 sm:$0xff]   ;;  %v1924_v54 = vld [vmem:[#allocation6 + $0x148] ss:$16 sps:$4 sm:$0xff]   ;;  %v1942_v55 = vld [vmem:[#allocation8 + $0x4] ss:$16 sps:$4 sm:$0xff]  }
  0x4a   :  { %488 = vmatprep.subr.bf16.mxu0 %v1856_v10  ;;  %530 = vmatpush1.bf16.msra.mxu1 %v1906_v31  ;;  %v1925_v56 = vld [vmem:[#allocation6 + $0x16c] ss:$16 sps:$4 sm:$0xff]   ;;  %v1892_v57 = vld [vmem:[#allocation3] ss:$8 sps:$4 sm:$0xff]   ;;  %v1948_v60 = vld [vmem:[#allocation8 + $0x24] ss:$16 sps:$4 sm:$0xff]  }
  0x4b   :  { %531 = vmatprep.subr.bf16.mxu1 %v1907_v32  ;;  %v1927_v58 = vld [vmem:[#allocation6 + $0x168] ss:$16 sps:$4 sm:$0xff]   ;;  %v1940_v59 = vld [vmem:[#allocation8] ss:$16 sps:$4 sm:$0xff]   ;;  %v1928_v61 = vld [vmem:[#allocation6 + $0x18c] ss:$16 sps:$4 sm:$0xff]  }
  0x4c   :  { %v1930_v62 = vld [vmem:[#allocation6 + $0x188] ss:$16 sps:$4 sm:$0xff]   ;;  %v1946_v63 = vld [vmem:[#allocation8 + $0x20] ss:$16 sps:$4 sm:$0xff]   ;;  %v1954_v0 = vld [vmem:[#allocation8 + $0x44] ss:$16 sps:$4 sm:$0xff]  }
  0x4d   :  { %489 = vmatpush1.bf16.msra.mxu0 %v1858_v11  ;;  %v1931_v1 = vld [vmem:[#allocation6 + $0x1ac] ss:$16 sps:$4 sm:$0xff]   ;;  %v1933_v2 = vld [vmem:[#allocation6 + $0x1a8] ss:$16 sps:$4 sm:$0xff]   ;;  %v1952_v3 = vld [vmem:[#allocation8 + $0x40] ss:$16 sps:$4 sm:$0xff]  }
  0x4e   :  { %490 = vmatprep.subr.bf16.mxu0 %v1859_v12  ;;  %532 = vmatpush1.bf16.msra.mxu1 %v1909_v35  ;;  %v1960_v4 = vld [vmem:[#allocation8 + $0x64] ss:$16 sps:$4 sm:$0xff]   ;;  %v1934_v5 = vld [vmem:[#allocation6 + $0x1cc] ss:$16 sps:$4 sm:$0xff]   ;;  %v1936_v6 = vld [vmem:[#allocation6 + $0x1c8] ss:$16 sps:$4 sm:$0xff]  }
  0x4f   :  { %533 = vmatprep.subr.bf16.mxu1 %v1910_v36  ;;  %v1958_v7 = vld [vmem:[#allocation8 + $0x60] ss:$16 sps:$4 sm:$0xff]   ;;  %v1966_v8 = vld [vmem:[#allocation8 + $0x84] ss:$16 sps:$4 sm:$0xff]   ;;  %v1937_v9 = vld [vmem:[#allocation6 + $0x1ec] ss:$16 sps:$4 sm:$0xff]  }
  0x50   :  { %v1939_v10 = vld [vmem:[#allocation6 + $0x1e8] ss:$16 sps:$4 sm:$0xff]   ;;  %v1945_v11 = vld [vmem:[#allocation8 + $0xc] ss:$16 sps:$4 sm:$0xff]   ;;  %v1964_v12 = vld [vmem:[#allocation8 + $0x80] ss:$16 sps:$4 sm:$0xff]  }
  0x51   :  { %491 = vmatpush1.bf16.msra.mxu0 %v1861_v14  ;;  %v1972_v13 = vld [vmem:[#allocation8 + $0xa4] ss:$16 sps:$4 sm:$0xff]   ;;  %v1970_v14 = vld [vmem:[#allocation8 + $0xa0] ss:$16 sps:$4 sm:$0xff]   ;;  %v1943_v15 = vld [vmem:[#allocation8 + $0x8] ss:$16 sps:$4 sm:$0xff]  }
  0x52   :  { %492 = vmatprep.subr.bf16.mxu0 %v1862_v16  ;;  %534 = vmatpush1.bf16.msra.mxu1 %v1912_v39  ;;  %v1978_v16 = vld [vmem:[#allocation8 + $0xc4] ss:$16 sps:$4 sm:$0xff]   ;;  %v1951_v17 = vld [vmem:[#allocation8 + $0x2c] ss:$16 sps:$4 sm:$0xff]   ;;  %v1976_v18 = vld [vmem:[#allocation8 + $0xc0] ss:$16 sps:$4 sm:$0xff]  }
  0x53   :  { %535 = vmatprep.subr.bf16.mxu1 %v1913_v40  ;;  %v1949_v19 = vld [vmem:[#allocation8 + $0x28] ss:$16 sps:$4 sm:$0xff]   ;;  %v1984_v20 = vld [vmem:[#allocation8 + $0xe4] ss:$16 sps:$4 sm:$0xff]   ;;  %s2233_s8 = smov [#allocation9]  }
  0x54   :  { %v1955_v23 = vld [vmem:[#allocation8 + $0x48] ss:$16 sps:$4 sm:$0xff]   ;;  %v1990_v24 = vld [vmem:[#allocation8 + $0x104] ss:$16 sps:$4 sm:$0xff]   ;;  %s1608_s9 = sshll.u32 %s2233_s8, 4  ;;  %s1609_s9 = int_to_ptr.vmem [resolvable:$true] %s1608_s9 }
  0x55   :  { %493 = vmatpush1.bf16.msra.mxu0 %v1864_v21  ;;  %v1957_v21 = vld [vmem:[#allocation8 + $0x4c] ss:$16 sps:$4 sm:$0xff]   ;;  %v1961_v27 = vld [vmem:[#allocation8 + $0x68] ss:$16 sps:$4 sm:$0xff]   ;;  %v1996_v28 = vld [vmem:[#allocation8 + $0x124] ss:$16 sps:$4 sm:$0xff]   ;;  %p2203_p11 = scmp.lt.s32.totalorder %s1609_s9, %s1609_s9 }
  0x56   :  { %494 = vmatprep.subr.bf16.mxu0 %v1865_v22  ;;  %536 = vmatpush1.bf16.msra.mxu1 %v1915_v43  ;;  %v1982_v22 = vld [vmem:[#allocation8 + $0xe0] ss:$16 sps:$4 sm:$0xff]   ;;  %v1967_v31 = vld [vmem:[#allocation8 + $0x88] ss:$16 sps:$4 sm:$0xff]   ;;  %v2002_v32 = vld [vmem:[#allocation8 + $0x144] ss:$16 sps:$4 sm:$0xff]  }
  0x57   :  { %537 = vmatprep.subr.bf16.mxu1 %v1916_v44  ;;  %v1973_v35 = vld [vmem:[#allocation8 + $0xa8] ss:$16 sps:$4 sm:$0xff]   ;;  %v2008_v36 = vld [vmem:[#allocation8 + $0x164] ss:$16 sps:$4 sm:$0xff]  }
  0x58   :  { %v1979_v39 = vld [vmem:[#allocation8 + $0xc8] ss:$16 sps:$4 sm:$0xff]   ;;  %v2014_v40 = vld [vmem:[#allocation8 + $0x184] ss:$16 sps:$4 sm:$0xff]  }
  0x59   :  { %495 = vmatpush1.bf16.msra.mxu0 %v1867_v25  ;;  %v1963_v25 = vld [vmem:[#allocation8 + $0x6c] ss:$16 sps:$4 sm:$0xff]   ;;  %v1985_v43 = vld [vmem:[#allocation8 + $0xe8] ss:$16 sps:$4 sm:$0xff]   ;;  %v2020_v44 = vld [vmem:[#allocation8 + $0x1a4] ss:$16 sps:$4 sm:$0xff]  }
  0x5a   :  { %496 = vmatprep.subr.bf16.mxu0 %v1868_v26  ;;  %538 = vmatpush1.bf16.msra.mxu1 %v1918_v47  ;;  %v1988_v26 = vld [vmem:[#allocation8 + $0x100] ss:$16 sps:$4 sm:$0xff]   ;;  %v1991_v47 = vld [vmem:[#allocation8 + $0x108] ss:$16 sps:$4 sm:$0xff]  }
  0x5b   :  { %539 = vmatprep.subr.bf16.mxu1 %v1919_v48  ;;  %v1999_v48 = vld [vmem:[#allocation8 + $0x12c] ss:$16 sps:$4 sm:$0xff]  }
  0x5d   :  { %497 = vmatpush1.bf16.msra.mxu0 %v1870_v29  ;;  %v1969_v29 = vld [vmem:[#allocation8 + $0x8c] ss:$16 sps:$4 sm:$0xff]  }
  0x5e   :  { %498 = vmatprep.subr.bf16.mxu0 %v1871_v30  ;;  %540 = vmatpush1.bf16.msra.mxu1 %v1921_v51  ;;  %v1994_v30 = vld [vmem:[#allocation8 + $0x120] ss:$16 sps:$4 sm:$0xff]   ;;  %v2003_v51 = vld [vmem:[#allocation8 + $0x148] ss:$16 sps:$4 sm:$0xff]  }
  0x5f   :  { %541 = vmatprep.subr.bf16.mxu1 %v1922_v52  ;;  %v2011_v52 = vld [vmem:[#allocation8 + $0x16c] ss:$16 sps:$4 sm:$0xff]  }
  0x61   :  { %499 = vmatpush1.bf16.msra.mxu0 %v1873_v33  ;;  %v1975_v33 = vld [vmem:[#allocation8 + $0xac] ss:$16 sps:$4 sm:$0xff]  }
  0x62   :  { %500 = vmatprep.subr.bf16.mxu0 %v1874_v34  ;;  %542 = vmatpush1.bf16.msra.mxu1 %v1924_v54  ;;  %v2000_v34 = vld [vmem:[#allocation8 + $0x140] ss:$16 sps:$4 sm:$0xff]   ;;  %v2017_v54 = vld [vmem:[#allocation8 + $0x18c] ss:$16 sps:$4 sm:$0xff]  }
  0x63   :  { %543 = vmatprep.subr.bf16.mxu1 %v1925_v56  ;;  %v2023_v56 = vld [vmem:[#allocation8 + $0x1ac] ss:$16 sps:$4 sm:$0xff]  }
  0x65   :  { %501 = vmatpush1.bf16.msra.mxu0 %v1876_v37  ;;  %v1981_v37 = vld [vmem:[#allocation8 + $0xcc] ss:$16 sps:$4 sm:$0xff]  }
  0x66   :  { %502 = vmatprep.subr.bf16.mxu0 %v1877_v38  ;;  %544 = vmatpush1.bf16.msra.mxu1 %v1927_v58  ;;  %v2006_v38 = vld [vmem:[#allocation8 + $0x160] ss:$16 sps:$4 sm:$0xff]   ;;  %v2026_v58 = vld [vmem:[#allocation8 + $0x1c4] ss:$16 sps:$4 sm:$0xff]  }
  0x67   :  { %545 = vmatprep.subr.bf16.mxu1 %v1928_v61  ;;  %v2027_v61 = vld [vmem:[#allocation8 + $0x1c8] ss:$16 sps:$4 sm:$0xff]  }
  0x69   :  { %503 = vmatpush1.bf16.msra.mxu0 %v1879_v41  ;;  %v1987_v41 = vld [vmem:[#allocation8 + $0xec] ss:$16 sps:$4 sm:$0xff]  }
  0x6a   :  { %504 = vmatprep.subr.bf16.mxu0 %v1880_v42  ;;  %546 = vmatpush1.bf16.msra.mxu1 %v1930_v62  ;;  %v2012_v42 = vld [vmem:[#allocation8 + $0x180] ss:$16 sps:$4 sm:$0xff]   ;;  %v2032_v62 = vld [vmem:[#allocation8 + $0x1e4] ss:$16 sps:$4 sm:$0xff]  }
  0x6b   :  { %547 = vmatprep.subr.bf16.mxu1 %v1931_v1  ;;  %v2033_v1 = vld [vmem:[#allocation8 + $0x1e8] ss:$16 sps:$4 sm:$0xff]  }
  0x6d   :  { %505 = vmatpush1.bf16.msra.mxu0 %v1882_v45  ;;  %v1993_v45 = vld [vmem:[#allocation8 + $0x10c] ss:$16 sps:$4 sm:$0xff]  }
  0x6e   :  { %506 = vmatprep.subr.bf16.mxu0 %v1883_v46  ;;  %548 = vmatpush1.bf16.msra.mxu1 %v1933_v2  ;;  %v2018_v46 = vld [vmem:[#allocation8 + $0x1a0] ss:$16 sps:$4 sm:$0xff]   ;;  %v2038_v2 = vld [vmem:[#allocation8 + $0x204] ss:$16 sps:$4 sm:$0xff]  }
  0x6f   :  { %549 = vmatprep.subr.bf16.mxu1 %v1934_v5 }
  0x71   :  { %507 = vmatpush1.bf16.msra.mxu0 %v1885_v49  ;;  %v1997_v49 = vld [vmem:[#allocation8 + $0x128] ss:$16 sps:$4 sm:$0xff]  }
  0x72   :  { %508 = vmatprep.subr.bf16.mxu0 %v1886_v50  ;;  %550 = vmatpush1.bf16.msra.mxu1 %v1936_v6  ;;  %v2005_v50 = vld [vmem:[#allocation8 + $0x14c] ss:$16 sps:$4 sm:$0xff]  }
  0x73   :  { %551 = vmatprep.subr.bf16.mxu1 %v1937_v9 }
  0x75   :  { %509 = vmatpush1.bf16.msra.mxu0 %v1890_v53  ;;  %v2009_v53 = vld [vmem:[#allocation8 + $0x168] ss:$16 sps:$4 sm:$0xff]  }
  0x76   :  { %1423 = vmatprep.subr.bf16.mxu0 %v1942_v55  ;;  %552 = vmatpush1.bf16.msra.mxu1 %v1939_v10  ;;  %v2015_v55 = vld [vmem:[#allocation8 + $0x188] ss:$16 sps:$4 sm:$0xff]  }
  0x77   :  { %1509 = vmatprep.subr.bf16.mxu1 %v1945_v11 }
  0x78   :  { %511 = vmatmul.mubr.bf16.vlgmr.msra.gmra.mrb[0].mxu0 %v1892_v57 }
  0x79   :  { %1424 = vmatpush1.bf16.msra.mxu0 %v1940_v59  ;;  %554 = vmatmul.mubr.bf16.vlgmr.msra.gmra.mrb[0].mxu1 %v1892_v57  ;;  %v2021_v57 = vld [vmem:[#allocation8 + $0x1a8] ss:$16 sps:$4 sm:$0xff]   ;;  %v2029_v59 = vld [vmem:[#allocation8 + $0x1cc] ss:$16 sps:$4 sm:$0xff]  }
  0x7a   :  { %1425 = vmatprep.subr.bf16.mxu0 %v1948_v60  ;;  %1510 = vmatpush1.bf16.msra.mxu1 %v1943_v15  ;;  %v2024_v60 = vld [vmem:[#allocation8 + $0x1c0] ss:$16 sps:$4 sm:$0xff]  }
  0x7b   :  { %1511 = vmatprep.subr.bf16.mxu1 %v1951_v17 }
  0x7d   :  { %1426 = vmatpush1.bf16.msra.mxu0 %v1946_v63  ;;  %v2035_v63 = vld [vmem:[#allocation8 + $0x1ec] ss:$16 sps:$4 sm:$0xff]  }
  0x7e   :  { %1427 = vmatprep.subr.bf16.mxu0 %v1954_v0  ;;  %1512 = vmatpush1.bf16.msra.mxu1 %v1949_v19  ;;  %v2030_v0 = vld [vmem:[#allocation8 + $0x1e0] ss:$16 sps:$4 sm:$0xff]  }
  0x7f   :  { %1513 = vmatprep.subr.bf16.mxu1 %v1957_v21 }
  0x81   :  { %1428 = vmatpush1.bf16.msra.mxu0 %v1952_v3  ;;  %v2041_v3 = vld [vmem:[#allocation8 + $0x20c] ss:$16 sps:$4 sm:$0xff]  }
  0x82   :  { %1429 = vmatprep.subr.bf16.mxu0 %v1960_v4  ;;  %1514 = vmatpush1.bf16.msra.mxu1 %v1955_v23  ;;  %v593_v4 = vlaneseq }
  0x83   :  { %1515 = vmatprep.subr.bf16.mxu1 %v1963_v25  ;;  %v2036_v25 = vld [vmem:[#allocation8 + $0x200] ss:$16 sps:$4 sm:$0xff]  }
  0x84   :  { %v2308_v5 = vshrl.u32 %v593_v4, 7  ;;  %v2075_v4 = vld [vmem:[#allocation8 + $0x2c8] ss:$16 sps:$4 sm:$0xff]  }
  0x85   :  { %1430 = vmatpush1.bf16.msra.mxu0 %v1958_v7  ;;  %v591_v7 = vld [vmem:[%s2354_s2] sm:$0xf] }
  0x86   :  { %1431 = vmatprep.subr.bf16.mxu0 %v1966_v8  ;;  %1516 = vmatpush1.bf16.msra.mxu1 %v1961_v27  ;;  %v595_v6 = vsub.s32 0, %v2308_v5  ;;  %v599_v8 = vsub.s32 1, %v2308_v5  ;;  %v2044_v27 = vld [vmem:[#allocation8 + $0x224] ss:$16 sps:$4 sm:$0xff]  }
  0x87   :  { %1517 = vmatprep.subr.bf16.mxu1 %v1969_v29  ;;  %v2042_v29 = vld [vmem:[#allocation8 + $0x220] ss:$16 sps:$4 sm:$0xff]  }
  0x88   :  { %v596_v9 = vrot.slane %v591_v7, %v595_v6  ;;  %v600_v10 = vrot.slane %v591_v7, %v599_v8 }
  0x89   :  { %1432 = vmatpush1.bf16.msra.mxu0 %v1964_v12 }
  0x8a   :  { %1433 = vmatprep.subr.bf16.mxu0 %v1972_v13  ;;  %1518 = vmatpush1.bf16.msra.mxu1 %v1967_v31  ;;  %v2050_v31 = vld [vmem:[#allocation8 + $0x244] ss:$16 sps:$4 sm:$0xff]  }
  0x8b   :  { %1519 = vmatprep.subr.bf16.mxu1 %v1975_v33  ;;  %v603_v33 = vsub.s32 2, %v2308_v5 }
  0x8d   :  { %1434 = vmatpush1.bf16.msra.mxu0 %v1970_v14 }
  0x8e   :  { %1435 = vmatprep.subr.bf16.mxu0 %v1978_v16  ;;  %1520 = vmatpush1.bf16.msra.mxu1 %v1973_v35  ;;  %v2048_v35 = vld [vmem:[#allocation8 + $0x240] ss:$16 sps:$4 sm:$0xff]  }
  0x8f   :  { %1521 = vmatprep.subr.bf16.mxu1 %v1981_v37  ;;  %v2056_v37 = vld [vmem:[#allocation8 + $0x264] ss:$16 sps:$4 sm:$0xff]  }
  0x91   :  { %1436 = vmatpush1.bf16.msra.mxu0 %v1976_v18 }
  0x92   :  { %1437 = vmatprep.subr.bf16.mxu0 %v1984_v20  ;;  %1522 = vmatpush1.bf16.msra.mxu1 %v1979_v39  ;;  %v604_v39 = vrot.slane %v591_v7, %v603_v33 }
  0x93   :  { %1523 = vmatprep.subr.bf16.mxu1 %v1987_v41  ;;  %v2054_v41 = vld [vmem:[#allocation8 + $0x260] ss:$16 sps:$4 sm:$0xff]  }
  0x95   :  { %1438 = vmatpush1.bf16.msra.mxu0 %v1982_v22 }
  0x96   :  { %1439 = vmatprep.subr.bf16.mxu0 %v1990_v24  ;;  %1524 = vmatpush1.bf16.msra.mxu1 %v1985_v43  ;;  %v2062_v43 = vld [vmem:[#allocation8 + $0x284] ss:$16 sps:$4 sm:$0xff]  }
  0x97   :  { %1525 = vmatprep.subr.bf16.mxu1 %v1993_v45 }
  0x99   :  { %1440 = vmatpush1.bf16.msra.mxu0 %v1988_v26  ;;  %v2039_v26 = vld [vmem:[#allocation8 + $0x208] ss:$16 sps:$4 sm:$0xff]  }
  0x9a   :  { %1441 = vmatprep.subr.bf16.mxu0 %v1996_v28  ;;  %1526 = vmatpush1.bf16.msra.mxu1 %v1991_v47  ;;  %v2047_v28 = vld [vmem:[#allocation8 + $0x22c] ss:$16 sps:$4 sm:$0xff]  }
  0x9b   :  { %1527 = vmatprep.subr.bf16.mxu1 %v1999_v48 }
  0x9d   :  { %1442 = vmatpush1.bf16.msra.mxu0 %v1994_v30  ;;  %v2045_v30 = vld [vmem:[#allocation8 + $0x228] ss:$16 sps:$4 sm:$0xff]  }
  0x9e   :  { %1443 = vmatprep.subr.bf16.mxu0 %v2002_v32  ;;  %1528 = vmatpush1.bf16.msra.mxu1 %v1997_v49  ;;  %v2053_v32 = vld [vmem:[#allocation8 + $0x24c] ss:$16 sps:$4 sm:$0xff]  }
  0x9f   :  { %1529 = vmatprep.subr.bf16.mxu1 %v2005_v50  ;;  %v2060_v50 = vld [vmem:[#allocation8 + $0x280] ss:$16 sps:$4 sm:$0xff]  }
  0xa1   :  { %1444 = vmatpush1.bf16.msra.mxu0 %v2000_v34  ;;  %v607_v34 = vsub.s32 3, %v2308_v5 }
  0xa2   :  { %1445 = vmatprep.subr.bf16.mxu0 %v2008_v36  ;;  %1530 = vmatpush1.bf16.msra.mxu1 %v2003_v51  ;;  %v2051_v36 = vld [vmem:[#allocation8 + $0x248] ss:$16 sps:$4 sm:$0xff]  }
  0xa3   :  { %1531 = vmatprep.subr.bf16.mxu1 %v2011_v52  ;;  %v2063_v51 = vld [vmem:[#allocation8 + $0x288] ss:$16 sps:$4 sm:$0xff]  }
  0xa5   :  { %1446 = vmatpush1.bf16.msra.mxu0 %v2006_v38  ;;  %v2059_v38 = vld [vmem:[#allocation8 + $0x26c] ss:$16 sps:$4 sm:$0xff]  }
  0xa6   :  { %1447 = vmatprep.subr.bf16.mxu0 %v2014_v40  ;;  %1532 = vmatpush1.bf16.msra.mxu1 %v2009_v53  ;;  %v608_v40 = vrot.slane %v591_v7, %v607_v34  ;;  %v2080_v7 = vld [vmem:[#allocation8 + $0x2e4] ss:$16 sps:$4 sm:$0xff]  }
  0xa7   :  { %1533 = vmatprep.subr.bf16.mxu1 %v2017_v54 }
  0xa9   :  { %1448 = vmatpush1.bf16.msra.mxu0 %v2012_v42  ;;  %v2057_v42 = vld [vmem:[#allocation8 + $0x268] ss:$16 sps:$4 sm:$0xff]  }
  0xaa   :  { %1449 = vmatprep.subr.bf16.mxu0 %v2020_v44  ;;  %1534 = vmatpush1.bf16.msra.mxu1 %v2015_v55  ;;  %v2065_v44 = vld [vmem:[#allocation8 + $0x28c] ss:$16 sps:$4 sm:$0xff]   ;;  %v2068_v55 = vld [vmem:[#allocation8 + $0x2a4] ss:$16 sps:$4 sm:$0xff]  }
  0xab   :  { %1535 = vmatprep.subr.bf16.mxu1 %v2023_v56  ;;  %v2071_v56 = vld [vmem:[#allocation8 + $0x2ac] ss:$16 sps:$4 sm:$0xff]  }
  0xad   :  { %1450 = vmatpush1.bf16.msra.mxu0 %v2018_v46 }
  0xae   :  { %1536 = vmatpush1.bf16.msra.mxu1 %v2021_v57  ;;  %1451 = vmatprep.subr.bf16.mxu0 %v2026_v58 }
  0xaf   :  { %1537 = vmatprep.subr.bf16.mxu1 %v2029_v59 }
  0xb1   :  { %1452 = vmatpush1.bf16.msra.mxu0 %v2024_v60 }
  0xb2   :  { %1538 = vmatpush1.bf16.msra.mxu1 %v2027_v61  ;;  %1453 = vmatprep.subr.bf16.mxu0 %v2032_v62  ;;  %v2066_v61 = vld [vmem:[#allocation8 + $0x2a0] ss:$16 sps:$4 sm:$0xff]   ;;  %v2069_v62 = vld [vmem:[#allocation8 + $0x2a8] ss:$16 sps:$4 sm:$0xff]  }
  0xb3   :  { %1539 = vmatprep.subr.bf16.mxu1 %v2035_v63 }
  0xb5   :  { %1454 = vmatpush1.bf16.msra.mxu0 %v2030_v0  ;;  %v2074_v0 = vld [vmem:[#allocation8 + $0x2c4] ss:$16 sps:$4 sm:$0xff]  }
  0xb6   :  { %1540 = vmatpush1.bf16.msra.mxu1 %v2033_v1  ;;  %1466 = vmatprep.subr.bf16.mxu0 %v2038_v2  ;;  %v2077_v1 = vld [vmem:[#allocation8 + $0x2cc] ss:$16 sps:$4 sm:$0xff]  }
  0xb7   :  { %1552 = vmatprep.subr.bf16.mxu1 %v2041_v3  ;;  %v2072_v3 = vld [vmem:[#allocation8 + $0x2c0] ss:$16 sps:$4 sm:$0xff]  }
 0x14b   :  { %v512_v11 = vpop.f32.mrb[0].mxu0 }
 0x14c   :  { %v613_v12 = vadd.f32 %v596_v9, %v512_v11  ;;  %v514_v13 = vpop.f32.mrb[1].mxu0  ;;  %v555_v45 = vpop.f32.mrb[0].mxu1  ;;  %v2081_v11 = vld [vmem:[#allocation8 + $0x2e8] ss:$16 sps:$4 sm:$0xff]  }
 0x14d   :  { %v614_v14 = vadd.f32 %v600_v10, %v514_v13  ;;  %v516_v15 = vpop.f32.mrb[2].mxu0  ;;  %v615_v46 = vadd.f32 %v604_v39, %v555_v45  ;;  %v557_v47 = vpop.f32.mrb[1].mxu1  ;;  %v2089_v13 = vld [vmem:[#allocation8 + $0x30c] ss:$16 sps:$4 sm:$0xff]   ;;  %v2129_v45 = vld [vmem:[#allocation8 + $0x3e8] ss:$16 sps:$4 sm:$0xff]  }
 0x14e   :  { %v617_v16 = vadd.f32 %v596_v9, %v516_v15  ;;  %v518_v17 = vpop.f32.mrb[3].mxu0  ;;  %v621_v19 = vmax.f32 %v613_v12, 0.0  ;;  %v616_v48 = vadd.f32 %v608_v40, %v557_v47  ;;  %v559_v49 = vpop.f32.mrb[2].mxu1  ;;  %v2083_v9 = vld [vmem:[#allocation8 + $0x2ec] ss:$16 sps:$4 sm:$0xff]  }
 0x14f   :  { %v618_v18 = vadd.f32 %v600_v10, %v518_v17  ;;  %v622_v21 = vmax.f32 %v614_v14, 0.0  ;;  %v623_v52 = vmax.f32 %v615_v46, 0.0  ;;  %v619_v53 = vadd.f32 %v604_v39, %v559_v49  ;;  %v561_v54 = vpop.f32.mrb[3].mxu1  ;;  %v2078_v10 = vld [vmem:[#allocation8 + $0x2e0] ss:$16 sps:$4 sm:$0xff]  }
 0x150   :  { %v625_v20 = vmax.f32 %v617_v16, 0.0  ;;  %v624_v57 = vmax.f32 %v616_v48, 0.0  ;;  %v620_v58 = vadd.f32 %v608_v40, %v561_v54  ;;  %v2086_v12 = vld [vmem:[#allocation8 + $0x304] ss:$16 sps:$4 sm:$0xff]   ;;  %v2084_v14 = vld [vmem:[#allocation8 + $0x300] ss:$16 sps:$4 sm:$0xff]  }
 0x151   :  { %v626_v22 = vmax.f32 %v618_v18, 0.0  ;;  %v627_v59 = vmax.f32 %v619_v53, 0.0  ;;  %v2087_v15 = vld [vmem:[#allocation8 + $0x308] ss:$16 sps:$4 sm:$0xff]   ;;  %v2092_v16 = vld [vmem:[#allocation8 + $0x324] ss:$16 sps:$4 sm:$0xff]  }
 0x152   :  { %v629_v23 = vpack.c.bf16 %v625_v20, %v621_v19  ;;  %v628_v60 = vmax.f32 %v620_v58, 0.0  ;;  %v2095_v17 = vld [vmem:[#allocation8 + $0x32c] ss:$16 sps:$4 sm:$0xff]   ;;  %v2090_v18 = vld [vmem:[#allocation8 + $0x320] ss:$16 sps:$4 sm:$0xff]  }
 0x153   :  { %v630_v24 = vpack.c.bf16 %v626_v22, %v622_v21  ;;  %v2325_v63 = vpack.c.bf16 %v627_v59, %v623_v52  ;;  %v2093_v19 = vld [vmem:[#allocation8 + $0x328] ss:$16 sps:$4 sm:$0xff]   ;;  %v2098_v20 = vld [vmem:[#allocation8 + $0x344] ss:$16 sps:$4 sm:$0xff]   ;;  %v2101_v21 = vld [vmem:[#allocation8 + $0x34c] ss:$16 sps:$4 sm:$0xff]  }
 0x154   :  { %v632_v2 = vpack.c.bf16 %v628_v60, %v624_v57  ;;  %v2096_v22 = vld [vmem:[#allocation8 + $0x340] ss:$16 sps:$4 sm:$0xff]   ;;  %v2125_v39 = vld [vmem:[#allocation8 + $0x3cc] ss:$16 sps:$4 sm:$0xff]  }
 0x155   :  { %1455 = vmatprep.mubr.bf16.mxu0 %v630_v24  ;;  %1541 = vmatprep.mubr.bf16.mxu1 %v630_v24  ;;  %v2104_v24 = vld [vmem:[#allocation8 + $0x364] ss:$16 sps:$4 sm:$0xff]   ;;  %v2120_v40 = vld [vmem:[#allocation8 + $0x3c0] ss:$16 sps:$4 sm:$0xff]  }
 0x156   :  { %1456 = vmatmul.mubr.bf16.vlgmr.msra.gmra.mrb[4].mxu0 %v629_v23  ;;  %1542 = vmatmul.mubr.bf16.vlgmr.msra.gmra.mrb[4].mxu1 %v629_v23  ;;  %v2099_v23 = vld [vmem:[#allocation8 + $0x348] ss:$16 sps:$4 sm:$0xff]   ;;  %v761_v46 = vld [vmem:[%s2356_s4] sm:$0xf]  ;;  %s2198_s4 = scalar_lea.vmem %s1609_s9, 1024 }
 0x157   :  { %1467 = vmatpush1.bf16.msra.mxu0 %v2036_v25  ;;  %1553 = vmatpush1.bf16.msra.mxu1 %v2039_v26  ;;  %v2107_v25 = vld [vmem:[#allocation8 + $0x36c] ss:$16 sps:$4 sm:$0xff]   ;;  %v2102_v26 = vld [vmem:[#allocation8 + $0x360] ss:$16 sps:$4 sm:$0xff]   ;;  %v766_v47 = vrot.slane %v761_v46, %v595_v6  ;;  %v774_v48 = vrot.slane %v761_v46, %v603_v33  ;;  %v770_v49 = vrot.slane %v761_v46, %v599_v8  ;;  %p2199_p10 = scmp.ne.s32.totalorder %s1609_s9, %s2198_s4  ;;  %p2204_p12 = scmp.lt.s32.totalorder %s2198_s4, %s2198_s4 }
 0x158   :  { %1468 = vmatprep.subr.bf16.mxu0 %v2044_v27  ;;  %1554 = vmatprep.subr.bf16.mxu1 %v2047_v28  ;;  %v2105_v27 = vld [vmem:[#allocation8 + $0x368] ss:$16 sps:$4 sm:$0xff]   ;;  %v2110_v28 = vld [vmem:[#allocation8 + $0x384] ss:$16 sps:$4 sm:$0xff]  }
 0x159   :  { %1498 = vmatprep.mubr.bf16.mxu0 %v632_v2  ;;  %1584 = vmatprep.mubr.bf16.mxu1 %v632_v2  ;;  %p2205_p13 = por %p2204_p12, %p2203_p11 }
 0x15b   :  { %1469 = vmatpush1.bf16.msra.mxu0 %v2042_v29  ;;  %1555 = vmatpush1.bf16.msra.mxu1 %v2045_v30  ;;  %v2113_v29 = vld [vmem:[#allocation8 + $0x38c] ss:$16 sps:$4 sm:$0xff]   ;;  %v2108_v30 = vld [vmem:[#allocation8 + $0x380] ss:$16 sps:$4 sm:$0xff]   ;;  %p2206_p0 = pnand %p2205_p13, %p2199_p10 }
 0x15c   :  { %1470 = vmatprep.subr.bf16.mxu0 %v2050_v31  ;;  %1556 = vmatprep.subr.bf16.mxu1 %v2053_v32  ;;  %v2111_v31 = vld [vmem:[#allocation8 + $0x388] ss:$16 sps:$4 sm:$0xff]   ;;  %v2116_v32 = vld [vmem:[#allocation8 + $0x3a4] ss:$16 sps:$4 sm:$0xff]  }
 0x15f   :  { %1471 = vmatpush1.bf16.msra.mxu0 %v2048_v35  ;;  %1557 = vmatpush1.bf16.msra.mxu1 %v2051_v36  ;;  %v2119_v35 = vld [vmem:[#allocation8 + $0x3ac] ss:$16 sps:$4 sm:$0xff]   ;;  %v2114_v36 = vld [vmem:[#allocation8 + $0x3a0] ss:$16 sps:$4 sm:$0xff]  }
 0x160   :  { %1472 = vmatprep.subr.bf16.mxu0 %v2056_v37  ;;  %1558 = vmatprep.subr.bf16.mxu1 %v2059_v38  ;;  %v2117_v37 = vld [vmem:[#allocation8 + $0x3a8] ss:$16 sps:$4 sm:$0xff]   ;;  %v2122_v38 = vld [vmem:[#allocation8 + $0x3c4] ss:$16 sps:$4 sm:$0xff]  }
 0x163   :  { %1473 = vmatpush1.bf16.msra.mxu0 %v2054_v41  ;;  %1559 = vmatpush1.bf16.msra.mxu1 %v2057_v42  ;;  %v2123_v41 = vld [vmem:[#allocation8 + $0x3c8] ss:$16 sps:$4 sm:$0xff]   ;;  %v2128_v42 = vld [vmem:[#allocation8 + $0x3e4] ss:$16 sps:$4 sm:$0xff]  }
 0x164   :  { %1474 = vmatprep.subr.bf16.mxu0 %v2062_v43  ;;  %1560 = vmatprep.subr.bf16.mxu1 %v2065_v44  ;;  %v2131_v43 = vld [vmem:[#allocation8 + $0x3ec] ss:$16 sps:$4 sm:$0xff]   ;;  %v2126_v44 = vld [vmem:[#allocation8 + $0x3e0] ss:$16 sps:$4 sm:$0xff]  }
 0x167   :  { %1475 = vmatpush1.bf16.msra.mxu0 %v2060_v50  ;;  %1561 = vmatpush1.bf16.msra.mxu1 %v2063_v51  ;;  %v778_v50 = vrot.slane %v761_v46, %v607_v34 }
 0x168   :  { %1476 = vmatprep.subr.bf16.mxu0 %v2068_v55  ;;  %1562 = vmatprep.subr.bf16.mxu1 %v2071_v56 }
 0x16b   :  { %1477 = vmatpush1.bf16.msra.mxu0 %v2066_v61  ;;  %1563 = vmatpush1.bf16.msra.mxu1 %v2069_v62 }
 0x16c   :  { %1478 = vmatprep.subr.bf16.mxu0 %v2074_v0  ;;  %1564 = vmatprep.subr.bf16.mxu1 %v2077_v1 }
 0x16f   :  { %1479 = vmatpush1.bf16.msra.mxu0 %v2072_v3  ;;  %1565 = vmatpush1.bf16.msra.mxu1 %v2075_v4 }
 0x170   :  { %1480 = vmatprep.subr.bf16.mxu0 %v2080_v7  ;;  %1566 = vmatprep.subr.bf16.mxu1 %v2083_v9 }
 0x173   :  { %1481 = vmatpush1.bf16.msra.mxu0 %v2078_v10  ;;  %1567 = vmatpush1.bf16.msra.mxu1 %v2081_v11 }
 0x174   :  { %1482 = vmatprep.subr.bf16.mxu0 %v2086_v12  ;;  %1568 = vmatprep.subr.bf16.mxu1 %v2089_v13 }
 0x177   :  { %1483 = vmatpush1.bf16.msra.mxu0 %v2084_v14  ;;  %1569 = vmatpush1.bf16.msra.mxu1 %v2087_v15 }
 0x178   :  { %1484 = vmatprep.subr.bf16.mxu0 %v2092_v16  ;;  %1570 = vmatprep.subr.bf16.mxu1 %v2095_v17 }
 0x17b   :  { %1485 = vmatpush1.bf16.msra.mxu0 %v2090_v18  ;;  %1571 = vmatpush1.bf16.msra.mxu1 %v2093_v19 }
 0x17c   :  { %1486 = vmatprep.subr.bf16.mxu0 %v2098_v20  ;;  %1572 = vmatprep.subr.bf16.mxu1 %v2101_v21 }
 0x17f   :  { %1487 = vmatpush1.bf16.msra.mxu0 %v2096_v22  ;;  %1573 = vmatpush1.bf16.msra.mxu1 %v2099_v23 }
 0x180   :  { %1488 = vmatprep.subr.bf16.mxu0 %v2104_v24  ;;  %1574 = vmatprep.subr.bf16.mxu1 %v2107_v25 }
 0x183   :  { %1489 = vmatpush1.bf16.msra.mxu0 %v2102_v26  ;;  %1575 = vmatpush1.bf16.msra.mxu1 %v2105_v27 }
 0x184   :  { %1490 = vmatprep.subr.bf16.mxu0 %v2110_v28  ;;  %1576 = vmatprep.subr.bf16.mxu1 %v2113_v29 }
 0x187   :  { %1491 = vmatpush1.bf16.msra.mxu0 %v2108_v30  ;;  %1577 = vmatpush1.bf16.msra.mxu1 %v2111_v31 }
 0x188   :  { %1492 = vmatprep.subr.bf16.mxu0 %v2116_v32  ;;  %1578 = vmatprep.subr.bf16.mxu1 %v2119_v35 }
 0x18b   :  { %1493 = vmatpush1.bf16.msra.mxu0 %v2114_v36  ;;  %1579 = vmatpush1.bf16.msra.mxu1 %v2117_v37 }
 0x18c   :  { %1494 = vmatprep.subr.bf16.mxu0 %v2122_v38  ;;  %1580 = vmatprep.subr.bf16.mxu1 %v2125_v39 }
 0x18f   :  { %1495 = vmatpush1.bf16.msra.mxu0 %v2120_v40  ;;  %1581 = vmatpush1.bf16.msra.mxu1 %v2123_v41 }
 0x190   :  { %1496 = vmatprep.subr.bf16.mxu0 %v2128_v42  ;;  %1582 = vmatprep.subr.bf16.mxu1 %v2131_v43 }
 0x193   :  { %1497 = vmatpush1.bf16.msra.mxu0 %v2126_v44  ;;  %1583 = vmatpush1.bf16.msra.mxu1 %v2129_v45 }
 0x196   :  { %1499 = vmatmul.mubr.bf16.vlgmr.msra.gmra.mrb[4].mxu0 %v2325_v63  ;;  %1585 = vmatmul.mubr.bf16.vlgmr.msra.gmra.mrb[4].mxu1 %v2325_v63 }
 0x269   :  { %v1500_v51 = vpop.f32.mrb[4].mxu0  ;;  %v1586_v52 = vpop.f32.mrb[4].mxu1 }
 0x26a   :  { %v1815_v53 = vadd.f32 %v1500_v51, %v766_v47  ;;  %v1819_v54 = vadd.f32 %v1586_v52, %v774_v48  ;;  %v1502_v55 = vpop.f32.mrb[5].mxu0  ;;  %v1588_v56 = vpop.f32.mrb[5].mxu1 }
 0x26b   :  { %v1816_v57 = vadd.f32 %v1502_v55, %v770_v49  ;;  %v1820_v58 = vadd.f32 %v1588_v56, %v778_v50  ;;  %v1504_v6 = vpop.f32.mrb[6].mxu0  ;;  %v1590_v59 = vpop.f32.mrb[6].mxu1 }
 0x26c   :  { %1595 = vst [vmem:[#allocation9] sm:$0xff] %v1815_v53  ;;  %1597 = vst [vmem:[#allocation9 + $0x10] sm:$0xff] %v1819_v54  ;;  %v1817_v33 = vadd.f32 %v1504_v6, %v766_v47  ;;  %v1821_v60 = vadd.f32 %v1590_v59, %v774_v48  ;;  %v1506_v8 = vpop.f32.mrb[7].mxu0  ;;  %v1592_v61 = vpop.f32.mrb[7].mxu1 }
 0x26d   :  { %1596 = vst [vmem:[#allocation9 + $0x8] sm:$0xff] %v1816_v57  ;;  %1598 = vst [vmem:[#allocation9 + $0x18] sm:$0xff] %v1820_v58  ;;  %v1818_v5 = vadd.f32 %v1506_v8, %v770_v49  ;;  %v1822_v34 = vadd.f32 %v1592_v61, %v778_v50 }
 0x26e   :  { %1599 = vst [vmem:[#allocation9 + $0x20] sm:$0xff] %v1817_v33  ;;  %1601 = vst [vmem:[#allocation9 + $0x30] sm:$0xff] %v1821_v60 }
 0x26f   :  { %1600 = vst [vmem:[#allocation9 + $0x28] sm:$0xff] %v1818_v5  ;;  %1602 = vst [vmem:[#allocation9 + $0x38] sm:$0xff] %v1822_v34 }
 0x270   :  { %2209 = shalt.err (!%p2206_p0)
}
 0x271   :  { %s2210_s12 = scalar_lea.hbm %s2357_s5, 1024 }
 0x272   :  { %p2211_p1 = scmp.ne.s32.totalorder %s2357_s5, %s2210_s12  ;;  %p2214_p2 = scmp.lt.u32.totalorder %s2210_s12, %s2357_s5 }
 0x274   :  { %p2216_p3 = pnand %p2214_p2, %p2211_p1 }
 0x276   :  { %2219 = shalt.err (!%p2216_p3)
}
 0x277   :  { %s2234_s1 = smov 512   ;;  %s2235_s17 = smov 32  }
 0x278   :  { %1614 = dma.vmem_to_hbm [thread:$0]  %s1609_s9, 1024, %s2357_s5, [#allocation5], %s2234_s1, %s2234_s1, %s2235_s17  }
 0x279   :  { %2224 = dma.done.wait [#allocation5], 1024  }
 0x27a   :  { %2225 = vsyncadd [#allocation5], 4294966272 }
 0x27b   :  { %1618 = vsyncpa [#allocation4], 1 }
 0x27c   :  { %1619 = vsyncpa [#allocation7], 1 }
 0x27d   :  { %1620 = vsyncpa [#allocation5], 1 }

</bundles_post_ra>
